<compile_context>
chip_gen: v7x
topology: tpu7x:2x2x1
jax: 0.10.0
libtpu: 0.0.40
codegen_flags: <defaults>
</compile_context>

<pallas_src>
import functools

import jax
import jax.numpy as jnp
import numpy as np
from jax import lax
from jax.experimental import pallas as pl
from jax.experimental.pallas import tpu as pltpu


# ----------------------------------------------------------------------------
# Kernels
# ----------------------------------------------------------------------------

def _masked_mean(h_ref, m_ref):
    """h_ref: (TB, L, H), m_ref: (TB, L) -> (TB, H) masked mean over tokens."""
    h = h_ref[...].astype(jnp.float32)                              # (TB, L, H)
    m = m_ref[...].astype(jnp.float32)                              # (TB, L)
    num = jnp.sum(h * m[:, :, None], axis=1)                        # (TB, H)
    den = jnp.maximum(jnp.sum(m, axis=1, keepdims=True), 1e-9)      # (TB, 1)
    return num / den


def eval_score_kernel(qh_ref, qm_ref, dh_ref, dm_ref, out_ref):
    """Fused eval path: pool query block, pool doc block, row-wise dot."""
    q_pool = _masked_mean(qh_ref, qm_ref)                           # (TB, H)
    d_pool = _masked_mean(dh_ref, dm_ref)                           # (TB, H)
    out_ref[...] = jnp.sum(q_pool * d_pool, axis=-1, keepdims=True)  # (TB, 1)


def pool_kernel(h_ref, m_ref, out_ref):
    """Masked mean pooling for a block of TB rows (training path)."""
    out_ref[...] = _masked_mean(h_ref, m_ref)                       # (TB, H)


def ce_loss_kernel(q_ref, d_ref, out_ref, *, group_size):
    """scores = q_pool @ d_pool.T ; mean cross-entropy vs labels arange(B)*G."""
    q = q_ref[...].astype(jnp.float32)   # (B, H)
    d = d_ref[...].astype(jnp.float32)   # (B*G, H)
    scores = lax.dot_general(
        q, d, (((1,), (1,)), ((), ())),
        precision=lax.Precision.HIGHEST,
        preferred_element_type=jnp.float32)                          # (B, B*G)
    b, bg = scores.shape
    col = lax.broadcasted_iota(jnp.int32, (b, bg), 1)
    tgt_col = lax.broadcasted_iota(jnp.int32, (b, bg), 0) * group_size
    target = jnp.sum(jnp.where(col == tgt_col, scores, 0.0),
                     axis=-1, keepdims=True)                         # (B, 1)
    m = jnp.max(scores, axis=-1, keepdims=True)
    lse = m + jnp.log(jnp.sum(jnp.exp(scores - m), axis=-1, keepdims=True))
    out_ref[...] = jnp.sum(lse - target, axis=0, keepdims=True) / b  # (1, 1)


# ----------------------------------------------------------------------------
# Wrappers
# ----------------------------------------------------------------------------

_VMEM_INPUT_BUDGET = 24 * 1024 * 1024  # double-buffered input tiles; v7x-safe


def _block_rows(n, per_row_bytes):
    """Rows per grid step: whole batch if tiny, else a multiple of 8 that keeps
    double-buffered input tiles under the VMEM budget (amortizes the ~0.35 us
    per-step overhead with the biggest tile that fits)."""
    if n <= 8:
        return n
    tb = min(1024, (n // 8) * 8)
    max_tb = max(8, _VMEM_INPUT_BUDGET // (2 * per_row_bytes))
    tb = min(tb, max(8, (max_tb // 8) * 8))
    return max(tb, 8)


def _pad_rows(x, n_pad):
    n = x.shape[0]
    if n == n_pad:
        return x
    pad = [(0, n_pad - n)] + [(0, 0)] * (x.ndim - 1)
    return jnp.pad(x, pad)


def _compiler_params(tb, per_row_bytes):
    vmem_limit = int(min(56 * 1024 * 1024,
                         max(16 * 1024 * 1024, 3 * tb * per_row_bytes)))
    return pltpu.CompilerParams(dimension_semantics=("parallel",),
                                vmem_limit_bytes=vmem_limit)


def _row_bytes(*arrays_2nd_plus_dims):
    """Bytes streamed per batch row for a list of (shape_tail, dtype) pairs."""
    total = 0
    for tail_shape, dtype in arrays_2nd_plus_dims:
        total += int(np.prod(tail_shape)) * jnp.dtype(dtype).itemsize
    return total


def retriever_qa_eval_scores(qry_hidden, qry_mask, doc_hidden, doc_mask):
    """Eval-mode forward: score_ir[b] = <pool(qry[b]), pool(doc[b])>."""
    n, lq, h = qry_hidden.shape
    nd, ld, hd = doc_hidden.shape
    assert nd == n and hd == h, "eval path pairs one doc per query"

    per_row = _row_bytes(((lq, h), qry_hidden.dtype),
                         ((ld, h), doc_hidden.dtype),
                         ((lq,), qry_mask.dtype),
                         ((ld,), doc_mask.dtype))
    tb = _block_rows(n, per_row)
    n_pad = ((n + tb - 1) // tb) * tb

    qh, qm = _pad_rows(qry_hidden, n_pad), _pad_rows(qry_mask, n_pad)
    dh, dm = _pad_rows(doc_hidden, n_pad), _pad_rows(doc_mask, n_pad)

    out = pl.pallas_call(
        eval_score_kernel,
        out_shape=jax.ShapeDtypeStruct((n_pad, 1), jnp.float32),
        grid_spec=pltpu.PrefetchScalarGridSpec(
            num_scalar_prefetch=0,
            grid=(n_pad // tb,),
            in_specs=[
                pl.BlockSpec((tb, lq, h), lambda b: (b, 0, 0)),   # qry hidden
                pl.BlockSpec((tb, lq), lambda b: (b, 0)),         # qry mask
                pl.BlockSpec((tb, ld, h), lambda b: (b, 0, 0)),   # doc hidden
                pl.BlockSpec((tb, ld), lambda b: (b, 0)),         # doc mask
            ],
            out_specs=pl.BlockSpec((tb, 1), lambda b: (b, 0)),
        ),
        compiler_params=_compiler_params(tb, per_row),
    )(qh, qm, dh, dm)
    return out[:n, 0]


def masked_mean_pool(hidden, mask):
    """Masked mean pooling over tokens, TB rows per grid step, (TB, H) output."""
    n, l, h = hidden.shape

    per_row = _row_bytes(((l, h), hidden.dtype), ((l,), mask.dtype),
                         ((h,), jnp.float32))
    tb = _block_rows(n, per_row)
    n_pad = ((n + tb - 1) // tb) * tb

    hp, mp = _pad_rows(hidden, n_pad), _pad_rows(mask, n_pad)

    out = pl.pallas_call(
        pool_kernel,
        out_shape=jax.ShapeDtypeStruct((n_pad, h), jnp.float32),
        grid_spec=pltpu.PrefetchScalarGridSpec(
            num_scalar_prefetch=0,
            grid=(n_pad // tb,),
            in_specs=[
                pl.BlockSpec((tb, l, h), lambda b: (b, 0, 0)),
                pl.BlockSpec((tb, l), lambda b: (b, 0)),
            ],
            out_specs=pl.BlockSpec((tb, h), lambda b: (b, 0)),
        ),
        compiler_params=_compiler_params(tb, per_row),
    )(hp, mp)
    return out[:n]


def retriever_qa_train_loss(qry_hidden, qry_mask, doc_hidden, doc_mask,
                            group_size):
    """Training-mode forward: in-batch contrastive cross-entropy loss."""
    q_pool = masked_mean_pool(qry_hidden, qry_mask)   # (B, H)  f32
    d_pool = masked_mean_pool(doc_hidden, doc_mask)   # (B*G, H) f32
    b, h = q_pool.shape
    bg = d_pool.shape[0]

    # TODO(synk): the (B, H) x (H, B*G) scores matmul + CE is done in a single
    # grid step (fits VMEM for retrieval-sized batches); tile over B*G if a
    # very large in-batch negative pool is ever used.
    loss = pl.pallas_call(
        functools.partial(ce_loss_kernel, group_size=group_size),
        out_shape=jax.ShapeDtypeStruct((1, 1), jnp.float32),
        grid_spec=pltpu.PrefetchScalarGridSpec(
            num_scalar_prefetch=0,
            grid=(1,),
            in_specs=[
                pl.BlockSpec((b, h), lambda i: (0, 0)),
                pl.BlockSpec((bg, h), lambda i: (0, 0)),
            ],
            out_specs=pl.BlockSpec((1, 1), lambda i: (0, 0)),
        ),
        compiler_params=pltpu.CompilerParams(
            dimension_semantics=("arbitrary",)),
    )(q_pool, d_pool)
    return loss[0, 0]


# ----------------------------------------------------------------------------
# Plain-JAX references (transcription of the PyTorch forward) for verification
# ----------------------------------------------------------------------------

def _ref_pool(h, m):
    me = m.astype(jnp.float32)[..., None]
    return (jnp.sum(h.astype(jnp.float32) * me, axis=1)
            / jnp.maximum(jnp.sum(me, axis=1), 1e-9))


def _ref_eval(qh, qm, dh, dm):
    return jnp.sum(_ref_pool(qh, qm) * _ref_pool(dh, dm), axis=-1)


def _ref_train_loss(qh, qm, dh, dm, g):
    qp = _ref_pool(qh, qm)
    dp = _ref_pool(dh, dm)
    scores = jnp.dot(qp, dp.T, precision=lax.Precision.HIGHEST)
    b = qp.shape[0]
    labels = jnp.arange(b) * g
    logp = jax.nn.log_softmax(scores, axis=-1)
    return -jnp.mean(logp[jnp.arange(b), labels])


if __name__ == "__main__":
    # Small shapes consistent with the module: B queries, B*G docs, seq lens
    # Lq/Ld, hidden H. (The HF encoder is not re-implemented; hidden states and
    # attention masks stand in for its outputs.)
    B, G, Lq, Ld, H = 2, 4, 8, 16, 32
    key = jax.random.PRNGKey(0)
    k1, k2, k3, k4 = jax.random.split(key, 4)

    qry_hidden = jax.random.normal(k1, (B, Lq, H), dtype=jnp.float32)
    doc_hidden = jax.random.normal(k2, (B * G, Ld, H), dtype=jnp.float32)

    q_len = jax.random.randint(k3, (B,), 1, Lq + 1)
    d_len = jax.random.randint(k4, (B * G,), 1, Ld + 1)
    qry_mask = (jnp.arange(Lq)[None, :] < q_len[:, None]).astype(jnp.float32)
    doc_mask = (jnp.arange(Ld)[None, :] < d_len[:, None]).astype(jnp.float32)

    # --- eval branch: score_ir for B paired (query, doc) rows ----------------
    dh_eval, dm_eval = doc_hidden[:B], doc_mask[:B]
    score = jax.block_until_ready(
        retriever_qa_eval_scores(qry_hidden, qry_mask, dh_eval, dm_eval))
    score_ref = jax.block_until_ready(
        _ref_eval(qry_hidden, qry_mask, dh_eval, dm_eval))
    np.testing.assert_allclose(np.asarray(score), np.asarray(score_ref),
                               rtol=1e-4, atol=1e-4)
    assert score.shape == (B,)

    # --- training branch: contrastive cross-entropy loss ---------------------
    loss = jax.block_until_ready(
        retriever_qa_train_loss(qry_hidden, qry_mask, doc_hidden, doc_mask, G))
    loss_ref = jax.block_until_ready(
        _ref_train_loss(qry_hidden, qry_mask, doc_hidden, doc_mask, G))
    np.testing.assert_allclose(np.asarray(loss), np.asarray(loss_ref),
                               rtol=1e-4, atol=1e-4)

    # TODO(synk): the pretrained HF encoder (self.model) and checkpoint I/O are
    # not expressed as Pallas kernels; kernels start from last_hidden_state.
    print("KERNEL_OK")
</pallas_src>

<mosaic_0001>
module attributes {stable_mosaic.version = 11 : i64} {
  func.func @eval_score_kernel(%arg0: i32, %arg1: memref<2x8x32xf32, #tpu.memory_space<vmem>>, %arg2: memref<2x8xf32, #tpu.memory_space<vmem>>, %arg3: memref<2x16x32xf32, #tpu.memory_space<vmem>>, %arg4: memref<2x16xf32, #tpu.memory_space<vmem>>, %arg5: memref<2x1xf32, #tpu.memory_space<vmem>>) attributes {dimension_semantics = [#tpu.dimension_semantics<parallel>], iteration_bounds = array<i64: 1>, scalar_prefetch = 0 : i64, scratch_operands = 0 : i64, tpu.core_type = #tpu.core_type<tc>, window_params = [{transform_indices = @transform_0, window_bounds = array<i64: 2, 8, 32>}, {transform_indices = @transform_1, window_bounds = array<i64: 2, 8>}, {transform_indices = @transform_2, window_bounds = array<i64: 2, 16, 32>}, {transform_indices = @transform_3, window_bounds = array<i64: 2, 16>}, {transform_indices = @transform_4, window_bounds = array<i64: 2, 1>}]} {
    %c0 = arith.constant 0 : index
    %c0_0 = arith.constant 0 : index
    %c0_1 = arith.constant 0 : index
    %0 = vector.load %arg1[%c0, %c0_0, %c0_1] : memref<2x8x32xf32, #tpu.memory_space<vmem>>, vector<2x8x32xf32>
    %c0_2 = arith.constant 0 : index
    %c0_3 = arith.constant 0 : index
    %1 = vector.load %arg2[%c0_2, %c0_3] : memref<2x8xf32, #tpu.memory_space<vmem>>, vector<2x8xf32>
    %2 = vector.shape_cast %1 : vector<2x8xf32> to vector<2x8x1xf32>
    %3 = vector.broadcast %2 : vector<2x8x1xf32> to vector<2x8x32xf32>
    %4 = arith.mulf %0, %3 : vector<2x8x32xf32>
    %cst = arith.constant dense<0.000000e+00> : vector<2x32xf32>
    %5 = vector.multi_reduction <add>, %4, %cst [1] : vector<2x8x32xf32> to vector<2x32xf32>
    %cst_4 = arith.constant dense<0.000000e+00> : vector<2xf32>
    %6 = vector.multi_reduction <add>, %1, %cst_4 [1] : vector<2x8xf32> to vector<2xf32>
    %7 = vector.shape_cast %6 : vector<2xf32> to vector<2x1xf32>
    %cst_5 = arith.constant 9.99999971E-10 : f32
    %8 = vector.broadcast %cst_5 : f32 to vector<2x1xf32>
    %9 = arith.maximumf %7, %8 : vector<2x1xf32>
    %10 = vector.broadcast %9 : vector<2x1xf32> to vector<2x32xf32>
    %11 = arith.divf %5, %10 : vector<2x32xf32>
    %c0_6 = arith.constant 0 : index
    %c0_7 = arith.constant 0 : index
    %c0_8 = arith.constant 0 : index
    %12 = vector.load %arg3[%c0_6, %c0_7, %c0_8] : memref<2x16x32xf32, #tpu.memory_space<vmem>>, vector<2x16x32xf32>
    %c0_9 = arith.constant 0 : index
    %c0_10 = arith.constant 0 : index
    %13 = vector.load %arg4[%c0_9, %c0_10] : memref<2x16xf32, #tpu.memory_space<vmem>>, vector<2x16xf32>
    %14 = vector.shape_cast %13 : vector<2x16xf32> to vector<2x16x1xf32>
    %15 = vector.broadcast %14 : vector<2x16x1xf32> to vector<2x16x32xf32>
    %16 = arith.mulf %12, %15 : vector<2x16x32xf32>
    %cst_11 = arith.constant dense<0.000000e+00> : vector<2x32xf32>
    %17 = vector.multi_reduction <add>, %16, %cst_11 [1] : vector<2x16x32xf32> to vector<2x32xf32>
    %cst_12 = arith.constant dense<0.000000e+00> : vector<2xf32>
    %18 = vector.multi_reduction <add>, %13, %cst_12 [1] : vector<2x16xf32> to vector<2xf32>
    %19 = vector.shape_cast %18 : vector<2xf32> to vector<2x1xf32>
    %cst_13 = arith.constant 9.99999971E-10 : f32
    %20 = vector.broadcast %cst_13 : f32 to vector<2x1xf32>
    %21 = arith.maximumf %19, %20 : vector<2x1xf32>
    %22 = vector.broadcast %21 : vector<2x1xf32> to vector<2x32xf32>
    %23 = arith.divf %17, %22 : vector<2x32xf32>
    %24 = arith.mulf %11, %23 : vector<2x32xf32>
    %cst_14 = arith.constant dense<0.000000e+00> : vector<2xf32>
    %25 = vector.multi_reduction <add>, %24, %cst_14 [1] : vector<2x32xf32> to vector<2xf32>
    %26 = vector.shape_cast %25 : vector<2xf32> to vector<2x1xf32>
    %c0_15 = arith.constant 0 : index
    %c0_16 = arith.constant 0 : index
    %27 = vector.load %arg5[%c0_15, %c0_16] : memref<2x1xf32, #tpu.memory_space<vmem>>, vector<2x1xf32>
    tpu.vector_store %arg5[%c0_15, %c0_16], %26 {strides = array<i32>} : memref<2x1xf32, #tpu.memory_space<vmem>>, vector<2x1xf32>,
    return
  }
  func.func @transform_0(%arg0: i32) -> (i32, i32, i32) {
    %c0_i32 = arith.constant 0 : i32
    %c0_i32_0 = arith.constant 0 : i32
    %c0_i32_1 = arith.constant 0 : i32
    return %arg0, %c0_i32, %c0_i32_0 : i32, i32, i32
  }
  func.func @transform_1(%arg0: i32) -> (i32, i32) {
    %c0_i32 = arith.constant 0 : i32
    %c0_i32_0 = arith.constant 0 : i32
    return %arg0, %c0_i32 : i32, i32
  }
  func.func @transform_2(%arg0: i32) -> (i32, i32, i32) {
    %c0_i32 = arith.constant 0 : i32
    %c0_i32_0 = arith.constant 0 : i32
    %c0_i32_1 = arith.constant 0 : i32
    return %arg0, %c0_i32, %c0_i32_0 : i32, i32, i32
  }
  func.func @transform_3(%arg0: i32) -> (i32, i32) {
    %c0_i32 = arith.constant 0 : i32
    %c0_i32_0 = arith.constant 0 : i32
    return %arg0, %c0_i32 : i32, i32
  }
  func.func @transform_4(%arg0: i32) -> (i32, i32) {
    %c0_i32 = arith.constant 0 : i32
    %c0_i32_0 = arith.constant 0 : i32
    return %arg0, %c0_i32 : i32, i32
  }
}

</mosaic_0001>

<bundles_post_ra>
// kernel: tpu_custom_call.1
= control target key start
LH: loop header
LB: loop body
LE: loop exit
PB: predicated region body
PF: predicated region fallthrough
CT: control target
= control target key end

     0   :  { %9 = vsyncpa [#allocation3], 0  ;;  %s302_s0 = inlined_call_operand.hbm [shape: f32[2,8,32], index: 0, kind: input, shape index: {}]   ;;  %s303_s1 = inlined_call_operand.vmem [shape: f32[2,8], index: 1, kind: input, shape index: {}]   ;;  %s304_s2 = inlined_call_operand.hbm [shape: f32[2,16,32], index: 2, kind: input, shape index: {}]   ;;  %s305_s3 = inlined_call_operand.vmem [shape: f32[2,16], index: 3, kind: input, shape index: {}]   ;;  %s306_s4 = inlined_call_operand.vmem [shape: f32[2,1], index: 4, kind: output, shape index: {}]  }
   0x1   :  { %10 = vsyncpa [#allocation5], 0  ;;  %s234_s15 = smov [#allocation2]   ;;  %s186_s19 = scalar_lea.hbm %s302_s0, 256 }
   0x2   :  { %s16_s16 = sshll.u32 %s234_s15, 4  ;;  %p187_p0 = scmp.ne.s32.totalorder %s302_s0, %s186_s19  ;;  %s17_s16 = int_to_ptr.vmem [resolvable:$true] %s16_s16 }
   0x3   :  { %p190_p1 = scmp.lt.u32.totalorder %s186_s19, %s302_s0 }
   0x5   :  { %p192_p2 = pnand %p190_p1, %p187_p0 }
   0x7   :  { %195 = shalt.err (!%p192_p2)
}
   0x8   :  { %s196_s24 = scalar_lea.vmem %s17_s16, 256  ;;  %p201_p4 = scmp.lt.s32.totalorder %s17_s16, %s17_s16 }
   0x9   :  { %p197_p3 = scmp.ne.s32.totalorder %s17_s16, %s196_s24  ;;  %p202_p5 = scmp.lt.s32.totalorder %s196_s24, %s196_s24 }
   0xb   :  { %p203_p6 = por %p202_p5, %p201_p4 }
   0xd   :  { %p204_p7 = pnand %p203_p6, %p197_p3 }
   0xf   :  { %207 = shalt.err (!%p204_p7)
}
  0x10   :  { %s235_s25 = smov 128   ;;  %s236_s26 = smov 8  }
  0x11   :  { %22 = dma.hbm_to_vmem [thread:$0]  %s302_s0, 256, %s17_s16, [#allocation3], %s235_s25, %s235_s25, %s236_s26  }
  0x12   :  { %s237_s29 = smov [#allocation4]   ;;  %s208_s7 = scalar_lea.hbm %s304_s2, 512 }
  0x13   :  { %s30_s30 = sshll.u32 %s237_s29, 4  ;;  %p209_p8 = scmp.ne.s32.totalorder %s304_s2, %s208_s7  ;;  %s31_s30 = int_to_ptr.vmem [resolvable:$true] %s30_s30 }
  0x14   :  { %p212_p9 = scmp.lt.u32.totalorder %s208_s7, %s304_s2 }
  0x16   :  { %p214_p10 = pnand %p212_p9, %p209_p8 }
  0x18   :  { %217 = shalt.err (!%p214_p10)
}
  0x19   :  { %s218_s12 = scalar_lea.vmem %s31_s30, 512  ;;  %p223_p12 = scmp.lt.s32.totalorder %s31_s30, %s31_s30 }
  0x1a   :  { %p219_p11 = scmp.ne.s32.totalorder %s31_s30, %s218_s12  ;;  %p224_p13 = scmp.lt.s32.totalorder %s218_s12, %s218_s12 }
  0x1c   :  { %p225_p0 = por %p224_p13, %p223_p12 }
  0x1e   :  { %p226_p1 = pnand %p225_p0, %p219_p11 }
  0x20   :  { %229 = shalt.err (!%p226_p1)
}
  0x21   :  { %36 = dma.hbm_to_vmem [thread:$0]  %s304_s2, 512, %s31_s30, [#allocation5], %s235_s25, %s235_s25, %s236_s26  }
  0x22   :  { %230 = dma.done.wait [#allocation3], 256  }
  0x23   :  { %231 = vsyncadd [#allocation3], 4294967040 }
  0x24   :  { %232 = dma.done.wait [#allocation5], 512  }
  0x25   :  { %233 = vsyncadd [#allocation5], 4294966784  ;;  %v48_v0 = vlaneseq  ;;  %vm79_vm0 = vcmask 58368   ;;  %v47_v3 = vld [vmem:[%s303_s1] sm:$0x3]  ;;  %vm141_vm1 = vcmask 123904  }
  0x26   :  { %v96_v4 = vld [vmem:[%s305_s3] sm:$0x3]  ;;  %v80_v5 = vsel %vm79_vm0, %v47_v3, 0.0  ;;  %v95_v17 = vld [vmem:[#allocation4 + $0x18] sm:$0xff]  ;;  %v92_v18 = vld [vmem:[#allocation4] sm:$0xff]  ;;  %vm64_vm2 = vcmask 261120  }
  0x27   :  { %v49_v1 = vshrl.u32 %v48_v0, 7  ;;  %81 = vadd.xlane.f32.xlu0 %v80_v5  ;;  %v142_v7 = vsel %vm141_vm1, %v96_v4, 0.0  ;;  %v94_v16 = vld [vmem:[#allocation4 + $0x10] sm:$0xff]  ;;  %v93_v19 = vld [vmem:[#allocation4 + $0x8] sm:$0xff]  ;;  %v46_v44 = vld [vmem:[#allocation2 + $0x8] sm:$0xff]  ;;  %vm159_vm3 = vcmask 1041409  }
  0x28   :  { %v45_v25 = vld [vmem:[#allocation2] sm:$0xff]  ;;  %vm162_vm4 = vcmask 254976   ;;  %vm166_vm5 = vcmask 1024  }
  0x29   :  { %v57_v2 = vsub.s32 1, %v49_v1  ;;  %v50_v8 = vsub.s32 0, %v49_v1 }
  0x2b   :  { %v111_v6 = vrot.slane %v96_v4, %v57_v2  ;;  %143 = vadd.xlane.f32.xlu0 %v142_v7  ;;  %v100_v9 = vrot.slane %v96_v4, %v50_v8  ;;  %v51_v10 = vrot.slane %v47_v3, %v50_v8  ;;  %v58_v11 = vrot.slane %v47_v3, %v57_v2 }
  0x2d   :  { %113 = vbcast.lane.b32.xlu1 %v111_v6, 256 }
  0x31   :  { %117 = vbcast.lane.b32.xlu1 %v111_v6, 264 }
  0x35   :  { %102 = vbcast.lane.b32.xlu1 %v100_v9, 256 }
  0x39   :  { %106 = vbcast.lane.b32.xlu1 %v100_v9, 264 }
  0x3d   :  { %53 = vbcast.lane.b32.xlu1 %v51_v10, 256 }
  0x41   :  { %60 = vbcast.lane.b32.xlu0 %v58_v11, 256 }
  0x9f   :  { %v114_v12 = vpop.permute.xlu1 %113 }
  0xa0   :  { %v121_v20 = vmul.f32 %v114_v12, %v94_v16 }
  0xa2   :  { %v132_v26 = vsel %vm64_vm2, %v121_v20, 0.0 }
  0xa3   :  { %v118_v13 = vpop.permute.xlu1 %117 }
  0xa4   :  { %v122_v21 = vmul.f32 %v118_v13, %v95_v17 }
  0xa6   :  { %v133_v27 = vsel %vm64_vm2, %v122_v21, 0.0 }
  0xa7   :  { %v103_v14 = vpop.permute.xlu1 %102  ;;  %v134_v31 = vadd.f32 %v133_v27, %v132_v26 }
  0xa8   :  { %v119_v22 = vmul.f32 %v103_v14, %v92_v18 }
  0xa9   :  { %v135_v35 = vrot.slane %v134_v31, 4 }
  0xaa   :  { %v123_v28 = vsel %vm64_vm2, %v119_v22, 0.0 }
  0xab   :  { %v107_v15 = vpop.permute.xlu1 %106  ;;  %v136_v41 = vadd.f32 %v135_v35, %v134_v31 }
  0xac   :  { %v120_v23 = vmul.f32 %v107_v15, %v93_v19 }
  0xad   :  { %v137_v49 = vrot.slane %v136_v41, 2 }
  0xae   :  { %v124_v29 = vsel %vm64_vm2, %v120_v23, 0.0 }
  0xaf   :  { %v54_v24 = vpop.permute.xlu1 %53  ;;  %v125_v32 = vadd.f32 %v124_v29, %v123_v28  ;;  %v138_v54 = vadd.f32 %v137_v49, %v136_v41 }
  0xb0   :  { %v62_v30 = vmul.f32 %v54_v24, %v45_v25 }
  0xb1   :  { %v126_v36 = vrot.slane %v125_v32, 4  ;;  %v139_v59 = vrot.slane %v138_v54, 1 }
  0xb2   :  { %v65_v33 = vsel %vm64_vm2, %v62_v30, 0.0 }
  0xb3   :  { %v66_v37 = vrot.slane %v65_v33, 4  ;;  %v127_v42 = vadd.f32 %v126_v36, %v125_v32  ;;  %v140_v3 = vadd.f32 %v139_v59, %v138_v54 }
  0xb4   :  { %v82_v34 = vpop.xlane.xlu0 %81 }
  0xb5   :  { %v83_v39 = vmax.f32 %v82_v34, 1e-09  ;;  %v67_v43 = vadd.f32 %v66_v37, %v65_v33  ;;  %v128_v50 = vrot.slane %v127_v42, 2 }
  0xb7   :  { %v85_v47 = vrot.slane %v83_v39, 1  ;;  %v68_v51 = vrot.slane %v67_v43, 2  ;;  %v129_v55 = vadd.f32 %v128_v50, %v127_v42 }
  0xb8   :  { %v144_v38 = vpop.xlane.xlu0 %143 }
  0xb9   :  { %v145_v40 = vmax.f32 %v144_v38, 1e-09  ;;  %v69_v56 = vadd.f32 %v68_v51, %v67_v43  ;;  %v130_v60 = vrot.slane %v129_v55, 1 }
  0xbb   :  { %v147_v45 = vrot.slane %v145_v40, 1  ;;  %178 = vrcp.f32 %v145_v40  ;;  %v70_v61 = vrot.slane %v69_v56, 1  ;;  %v131_v4 = vadd.f32 %v130_v60, %v129_v55 }
  0xbc   :  { %v61_v46 = vpop.permute.xlu0 %60 }
  0xbd   :  { %v63_v48 = vmul.f32 %v61_v46, %v46_v44  ;;  %180 = vrcp.f32 %v147_v45  ;;  %v71_v5 = vadd.f32 %v70_v61, %v69_v56 }
  0xbe   :  { %182 = vrcp.f32 %v83_v39 }
  0xbf   :  { %v72_v52 = vsel %vm64_vm2, %v63_v48, 0.0  ;;  %184 = vrcp.f32 %v85_v47 }
  0xc0   :  { %v73_v53 = vrot.slane %v72_v52, 4 }
  0xc2   :  { %v74_v57 = vadd.f32 %v73_v53, %v72_v52 }
  0xc4   :  { %v75_v58 = vrot.slane %v74_v57, 2 }
  0xc5   :  { %v179_v63 = vpop.eup %178 }
  0xc6   :  { %v76_v62 = vadd.f32 %v75_v58, %v74_v57  ;;  %v151_v9 = vmul.f32 %v179_v63, %v131_v4 }
  0xc7   :  { %v181_v1 = vpop.eup %180 }
  0xc8   :  { %v77_v0 = vrot.slane %v76_v62, 1  ;;  %v183_v2 = vpop.eup %182  ;;  %v153_v10 = vmul.f32 %v181_v1, %v140_v3 }
  0xc9   :  { %v185_v7 = vpop.eup %184  ;;  %v89_v11 = vmul.f32 %v183_v2, %v71_v5 }
  0xca   :  { %v78_v6 = vadd.f32 %v77_v0, %v76_v62 }
  0xcb   :  { %v154_v13 = vmul.f32 %v151_v9, %v89_v11 }
  0xcc   :  { %v91_v8 = vmul.f32 %v185_v7, %v78_v6 }
  0xce   :  { %v155_v12 = vmul.f32 %v153_v10, %v91_v8 }
  0xd0   :  { %v158_v14 = vrot.slane %v155_v12, 7 }
  0xd2   :  { %v160_v15 = vsel %vm159_vm3, %v158_v14, %v154_v13 }
  0xd3   :  { %v163_v16 = vsel %vm162_vm4, %v160_v15, 0.0 }
  0xd4   :  { %164 = vadd.xlane.f32.xlu1 %v163_v16 }
 0x161   :  { %v165_v17 = vpop.xlane.xlu1 %164 }
 0x162   :  { %167 = vst.msk [vmem:[%s306_s4] sm:$0x3] %vm166_vm5, %v165_v17 }
 0x163   :  { %172 = vsyncpa [#allocation3], 1 }
 0x164   :  { %173 = vsyncpa [#allocation5], 1 }

</bundles_post_ra>
